<compile_context>
chip_gen: v6e
topology: v6e:2x2x1
jax: 0.10.0
libtpu: 0.0.40
codegen_flags: <defaults>
</compile_context>

<pallas_src>
import jax
import jax.numpy as jnp
from jax.experimental import pallas as pl
from jax.experimental.pallas import tpu as pltpu


def dual_attention_kernel(x_ref, w3_ref, b3_ref, gb_ref, o_ref):
    rows, d = x_ref.shape            # rows = 2 * Bt * S  (stream-major halves)
    n2, _ = o_ref.shape              # n2   = 2 * Bt
    s = rows // n2                   # sequence length
    half = rows // 2                 # Bt * S

    x = x_ref[...].astype(jnp.float32)           # (2*Bt*S, D)
    w3 = w3_ref[...].astype(jnp.float32)         # (D, 3D)  [Wq | Wk | Wv]
    b3 = b3_ref[...].astype(jnp.float32)         # (1, 3D)  [bq | bk | bv]
    gb = gb_ref[...].astype(jnp.float32)         # (2, D)   [gamma; beta]
    gamma = gb[0:1, :]
    beta = gb[1:2, :]

    # --- Fused projection: both streams, all of Q/K/V, one MXU matmul. ---
    qkv = jnp.dot(x, w3, preferred_element_type=jnp.float32) + b3
    qkv = jnp.maximum(qkv, 0.0)                  # ReLU, (2*Bt*S, 3D)

    q = qkv[:, 0:d]
    k = qkv[:, d:2 * d]
    v = qkv[:, 2 * d:3 * d]

    # Cross-stream Q: swap the two stream halves with a single sublane roll
    # (half-length shift => direction-agnostic; XLU slot, off the VALU path).
    q_other = pltpu.roll(q, shift=half, axis=0)  # (2*Bt*S, D)

    # Grouped per-(stream, batch) views of the same slabs.
    qo = q_other.reshape(n2, s, d)
    kg = k.reshape(n2, s, d)
    vg = v.reshape(n2, s, d)
    xg = x.reshape(n2, s, d)

    # --- One batched attention pass for both streams. ---
    # torch: a = tanh(bmm(k_self, q_other^T)), a[b,i,j] = k_self[b,i].q_other[b,j]
    # We compute scores[b,j,i] = q_other[b,j].k_self[b,i]; summing over j
    # (torch dim=2) is then a sublane reduction and the softmax stays on lanes.
    scores = jnp.tanh(jnp.einsum('bjd,bid->bji', qo, kg,
                                 preferred_element_type=jnp.float32))  # (2Bt,S,S)
    s_sum = jnp.sum(scores, axis=1)                   # (2*Bt, S)  sum over j
    w = jax.nn.softmax(s_sum, axis=-1)                # softmax over seq (torch dim=1)
    # TODO(synk): nn.Dropout(p=0.2) is identity in eval mode; not applied.

    # Weighted sum as VPU broadcast-multiply + sublane reduce (no M=1 matvecs).
    vec = jnp.sum(w[:, :, None] * vg, axis=1)         # (2*Bt, D)

    # Residual mean + LayerNorm, batched over both streams at once.
    h = jnp.mean(xg, axis=1) + vec                    # (2*Bt, D)
    mu = jnp.mean(h, axis=-1, keepdims=True)
    var = jnp.mean((h - mu) ** 2, axis=-1, keepdims=True)
    o = (h - mu) * jax.lax.rsqrt(var + 1e-5) * gamma + beta

    o_ref[...] = o.astype(o_ref.dtype)                # (2*Bt, D)


def _device_kind():
    try:
        return jax.devices()[0].device_kind.lower()
    except Exception:
        return ""


def _vmem_budget_bytes():
    kind = _device_kind()
    if "v7" in kind:
        return 24 * 1024 * 1024   # v7x: 64 MiB physical / 32 MiB default scoped
    return 12 * 1024 * 1024       # stay under v5e's 16 MiB default scoped limit


def _per_step_vmem_bytes(bt, S, D):
    rows = 2 * bt * S
    x_block = rows * D * 4
    qkv = rows * 3 * D * 4
    scores = 2 * bt * S * S * 4
    out_block = 2 * bt * D * 4
    weights = (D * 3 * D + 3 * D + 2 * D) * 4
    # Double-buffered I/O blocks + main intermediates, with slack on the
    # quadratic score term (what blows up first as S grows).
    return 2 * (x_block + out_block + weights) + 2 * qkv + 3 * scores


def _choose_block_b(B, S, D, *, prefer_two_steps):
    """Largest divisor Bt of B whose per-step footprint fits the VMEM budget.
    On single-TC chips (v5e/v6e) take the whole batch in one grid step;
    on v7x prefer >= 2 grid steps so both TensorCores get work."""
    budget = _vmem_budget_bytes()
    divisors = [b for b in range(1, B + 1) if B % b == 0]
    fitting = [b for b in divisors if _per_step_vmem_bytes(b, S, D) <= budget] or [1]
    if prefer_two_steps and B >= 2:
        two_step = [b for b in fitting if B // b >= 2]
        if two_step:
            return max(two_step)
    return max(fitting)


def dual_attention(x1, x2, params, *, block_b=None):
    """x1, x2: (B, S, D) float32. Returns (vector1, vector2) each (B, D)."""
    B, S, D = x1.shape
    assert x2.shape == (B, S, D)
    wq, bq, wk, bk, wv, bv, gamma, beta = params

    # Pack constant operands (fewer DMA descriptors, one fused projection).
    w3 = jnp.concatenate([wq, wk, wv], axis=1)       # (D, 3D)
    b3 = jnp.concatenate([bq, bk, bv], axis=1)       # (1, 3D)
    gb = jnp.concatenate([gamma, beta], axis=0)      # (2, D)

    if block_b is None:
        block_b = _choose_block_b(B, S, D, prefer_two_steps="v7" in _device_kind())
    if B % block_b != 0:
        raise ValueError(f"block_b={block_b} must divide batch size B={B}")
    ns = B // block_b
    grid = (ns,)

    # Wrapper-side stream packing (pure layout plumbing, free under XLA):
    # step b sees one contiguous slab [x1 block ; x2 block] of (2*Bt*S, D).
    x_packed = jnp.stack(
        [x1.reshape(ns, block_b, S, D), x2.reshape(ns, block_b, S, D)],
        axis=1).reshape(ns, 2 * block_b * S, D)

    x_spec = pl.BlockSpec((None, 2 * block_b * S, D), lambda b: (b, 0, 0))
    w_spec = pl.BlockSpec((D, 3 * D), lambda b: (0, 0))
    b_spec = pl.BlockSpec((1, 3 * D), lambda b: (0, 0))
    gb_spec = pl.BlockSpec((2, D), lambda b: (0, 0))
    o_spec = pl.BlockSpec((None, 2 * block_b, D), lambda b: (b, 0, 0))

    flops = int(2 * (2 * B * S) * D * (3 * D)        # fused projection
                + 2 * (2 * B) * S * S * D            # batched score matmul
                + 2 * (2 * B * S * D))               # weighted sums
    transcendentals = int(2 * B * S * S + 2 * B * S)  # tanh + softmax exp
    bytes_accessed = int(4 * (2 * B * S * D + D * 3 * D + 3 * D + 2 * D
                              + B * 2 * D))

    out = pl.pallas_call(
        dual_attention_kernel,
        out_shape=jax.ShapeDtypeStruct((ns, 2 * block_b, D), jnp.float32),
        grid_spec=pltpu.PrefetchScalarGridSpec(
            num_scalar_prefetch=0,
            grid=grid,
            in_specs=[x_spec, w_spec, b_spec, gb_spec],
            out_specs=o_spec,
        ),
        # "parallel" lets the runtime shard the batch axis across TCs on v7x;
        # (pltpu.CORE_PARALLEL is the fallback if a profile shows one TC idle).
        compiler_params=pltpu.CompilerParams(
            dimension_semantics=("parallel",)),
        cost_estimate=pl.CostEstimate(
            flops=flops,
            transcendentals=transcendentals,
            bytes_accessed=bytes_accessed),
    )(x_packed, w3, b3, gb)

    out = out.reshape(ns, 2, block_b, D)
    return out[:, 0].reshape(B, D), out[:, 1].reshape(B, D)


def dual_attention_ref(x1, x2, params):
    """Pure-JAX reference mirroring the PyTorch forward (eval mode)."""
    wq, bq, wk, bk, wv, bv, gamma, beta = params

    def proj(x, w, b):
        return jax.nn.relu(jnp.einsum('bsd,de->bse', x, w) + b)

    q1, k1, v1 = proj(x1, wq, bq), proj(x1, wk, bk), proj(x1, wv, bv)
    q2, k2, v2 = proj(x2, wq, bq), proj(x2, wk, bk), proj(x2, wv, bv)

    a1 = jnp.tanh(jnp.einsum('bid,bjd->bij', k1, q2))
    a2 = jnp.tanh(jnp.einsum('bid,bjd->bij', k2, q1))
    w1 = jax.nn.softmax(jnp.sum(a1, axis=2), axis=1)[:, None, :]   # (B,1,S)
    w2 = jax.nn.softmax(jnp.sum(a2, axis=2), axis=1)[:, None, :]
    vec1 = jnp.einsum('bis,bsd->bid', w1, v1)[:, 0, :]
    vec2 = jnp.einsum('bis,bsd->bid', w2, v2)[:, 0, :]

    def ln(h):
        mu = jnp.mean(h, axis=-1, keepdims=True)
        var = jnp.mean((h - mu) ** 2, axis=-1, keepdims=True)
        return (h - mu) * jax.lax.rsqrt(var + 1e-5) * gamma + beta

    v1o = ln(jnp.mean(x1, axis=1) + vec1)
    v2o = ln(jnp.mean(x2, axis=1) + vec2)
    return v1o, v2o


if __name__ == "__main__":
    B, S, D = 2, 8, 32          # dim=32, num_heads=4 -> dim_per_head=8
    key = jax.random.PRNGKey(0)
    k_x1, k_x2, k_wq, k_bq, k_wk, k_bk, k_wv, k_bv = jax.random.split(key, 8)

    x1 = jax.random.normal(k_x1, (B, S, D), dtype=jnp.float32)
    x2 = jax.random.normal(k_x2, (B, S, D), dtype=jnp.float32)

    scale = 1.0 / jnp.sqrt(jnp.float32(D))
    # Weights stored as (in, out) so y = x @ W + b.
    wq = jax.random.uniform(k_wq, (D, D), jnp.float32, -scale, scale)
    wk = jax.random.uniform(k_wk, (D, D), jnp.float32, -scale, scale)
    wv = jax.random.uniform(k_wv, (D, D), jnp.float32, -scale, scale)
    bq = jax.random.uniform(k_bq, (1, D), jnp.float32, -scale, scale)
    bk = jax.random.uniform(k_bk, (1, D), jnp.float32, -scale, scale)
    bv = jax.random.uniform(k_bv, (1, D), jnp.float32, -scale, scale)
    gamma = jnp.ones((1, D), jnp.float32)   # LayerNorm default init
    beta = jnp.zeros((1, D), jnp.float32)

    params = (wq, bq, wk, bk, wv, bv, gamma, beta)

    out1, out2 = dual_attention(x1, x2, params)
    jax.block_until_ready((out1, out2))

    ref1, ref2 = dual_attention_ref(x1, x2, params)
    assert out1.shape == (B, D) and out2.shape == (B, D)
    assert jnp.allclose(out1, ref1, atol=1e-4, rtol=1e-4)
    assert jnp.allclose(out2, ref2, atol=1e-4, rtol=1e-4)

    print("KERNEL_OK")
</pallas_src>

<mosaic_0001>
module attributes {stable_mosaic.version = 11 : i64} {
  func.func @dual_attention_kernel(%arg0: i32, %arg1: memref<1x32x32xf32, #tpu.memory_space<vmem>>, %arg2: memref<32x96xf32, #tpu.memory_space<vmem>>, %arg3: memref<1x96xf32, #tpu.memory_space<vmem>>, %arg4: memref<2x32xf32, #tpu.memory_space<vmem>>, %arg5: memref<1x4x32xf32, #tpu.memory_space<vmem>>) attributes {dimension_semantics = [#tpu.dimension_semantics<parallel>], iteration_bounds = array<i64: 1>, scalar_prefetch = 0 : i64, scratch_operands = 0 : i64, tpu.core_type = #tpu.core_type<tc>, window_params = [{transform_indices = @transform_0, window_bounds = array<i64: 1, 32, 32>}, {pipeline_mode = #tpu.pipeline_mode<synchronous>, transform_indices = @transform_1, window_bounds = array<i64: 32, 96>}, {pipeline_mode = #tpu.pipeline_mode<synchronous>, transform_indices = @transform_2, window_bounds = array<i64: 1, 96>}, {pipeline_mode = #tpu.pipeline_mode<synchronous>, transform_indices = @transform_3, window_bounds = array<i64: 2, 32>}, {transform_indices = @transform_4, window_bounds = array<i64: 1, 4, 32>}]} {
    %c0 = arith.constant 0 : index
    %c0_0 = arith.constant 0 : index
    %c0_1 = arith.constant 0 : index
    %0 = vector.load %arg1[%c0, %c0_0, %c0_1] : memref<1x32x32xf32, #tpu.memory_space<vmem>>, vector<1x32x32xf32>
    %1 = vector.shape_cast %0 : vector<1x32x32xf32> to vector<32x32xf32>
    %c0_2 = arith.constant 0 : index
    %c0_3 = arith.constant 0 : index
    %2 = vector.load %arg2[%c0_2, %c0_3] : memref<32x96xf32, #tpu.memory_space<vmem>>, vector<32x96xf32>
    %c0_4 = arith.constant 0 : index
    %c0_5 = arith.constant 0 : index
    %3 = vector.load %arg3[%c0_4, %c0_5] : memref<1x96xf32, #tpu.memory_space<vmem>>, vector<1x96xf32>
    %c0_6 = arith.constant 0 : index
    %c0_7 = arith.constant 0 : index
    %4 = vector.load %arg4[%c0_6, %c0_7] : memref<2x32xf32, #tpu.memory_space<vmem>>, vector<2x32xf32>
    %5 = vector.extract_strided_slice %4 {offsets = [0, 0], sizes = [1, 32], strides = [1, 1]} : vector<2x32xf32> to vector<1x32xf32>
    %6 = vector.extract_strided_slice %4 {offsets = [1, 0], sizes = [1, 32], strides = [1, 1]} : vector<2x32xf32> to vector<1x32xf32>
    %cst = arith.constant dense<0.000000e+00> : vector<32x96xf32>
    %7 = tpu.matmul %1, %2, %cst {dimension_numbers = #tpu.dot_dimension_numbers<[1], [0], [0], [1], [0, 0, 1, 1], [], []>} : vector<32x32xf32>, vector<32x96xf32>, vector<32x96xf32> -> vector<32x96xf32>
    %8 = vector.broadcast %3 : vector<1x96xf32> to vector<32x96xf32>
    %9 = arith.addf %7, %8 : vector<32x96xf32>
    %cst_8 = arith.constant 0.000000e+00 : f32
    %10 = vector.broadcast %cst_8 : f32 to vector<32x96xf32>
    %11 = arith.maximumf %9, %10 : vector<32x96xf32>
    %12 = vector.extract_strided_slice %11 {offsets = [0, 0], sizes = [32, 32], strides = [1, 1]} : vector<32x96xf32> to vector<32x32xf32>
    %13 = vector.extract_strided_slice %11 {offsets = [0, 32], sizes = [32, 32], strides = [1, 1]} : vector<32x96xf32> to vector<32x32xf32>
    %14 = vector.extract_strided_slice %11 {offsets = [0, 64], sizes = [32, 32], strides = [1, 1]} : vector<32x96xf32> to vector<32x32xf32>
    %c16_i32 = arith.constant 16 : i32
    %15 = tpu.dynamic_rotate %12 by %c16_i32 dim 0 : vector<32x32xf32>, i32 -> vector<32x32xf32>
    %16 = vector.shape_cast %15 : vector<32x32xf32> to vector<4x8x32xf32>
    %17 = vector.shape_cast %13 : vector<32x32xf32> to vector<4x8x32xf32>
    %18 = vector.shape_cast %14 : vector<32x32xf32> to vector<4x8x32xf32>
    %19 = vector.shape_cast %1 : vector<32x32xf32> to vector<4x8x32xf32>
    "tpu.trace_start"() <{level = 10 : i32, message = "bjd,bid->bji"}> : () -> ()
    %cst_9 = arith.constant dense<0.000000e+00> : vector<4x8x8xf32>
    %20 = tpu.matmul %16, %17, %cst_9 {dimension_numbers = #tpu.dot_dimension_numbers<[2], [2], [1], [1], [0, 0, 0, 1, 1, 1], [0], [0]>} : vector<4x8x32xf32>, vector<4x8x32xf32>, vector<4x8x8xf32> -> vector<4x8x8xf32>
    "tpu.trace_stop"() : () -> ()
    %21 = math.tanh %20 : vector<4x8x8xf32>
    %cst_10 = arith.constant dense<0.000000e+00> : vector<4x8xf32>
    %22 = vector.multi_reduction <add>, %21, %cst_10 [1] : vector<4x8x8xf32> to vector<4x8xf32>
    %cst_11 = arith.constant dense<0xFF800000> : vector<4xf32>
    %23 = vector.multi_reduction <maximumf>, %22, %cst_11 [1] : vector<4x8xf32> to vector<4xf32>
    %cst_12 = arith.constant 0xFF800000 : f32
    %24 = vector.broadcast %cst_12 : f32 to vector<4xf32>
    %25 = arith.maximumf %24, %23 : vector<4xf32>
    %26 = vector.shape_cast %25 : vector<4xf32> to vector<4x1xf32>
    %27 = vector.broadcast %26 : vector<4x1xf32> to vector<4x8xf32>
    %28 = arith.subf %22, %27 : vector<4x8xf32>
    %29 = math.exp %28 : vector<4x8xf32>
    %cst_13 = arith.constant dense<0.000000e+00> : vector<4xf32>
    %30 = vector.multi_reduction <add>, %29, %cst_13 [1] : vector<4x8xf32> to vector<4xf32>
    %31 = vector.shape_cast %30 : vector<4xf32> to vector<4x1xf32>
    %32 = vector.broadcast %31 : vector<4x1xf32> to vector<4x8xf32>
    %33 = arith.divf %29, %32 : vector<4x8xf32>
    %34 = vector.shape_cast %33 : vector<4x8xf32> to vector<4x8x1xf32>
    %35 = vector.broadcast %34 : vector<4x8x1xf32> to vector<4x8x32xf32>
    %36 = arith.mulf %35, %18 : vector<4x8x32xf32>
    %cst_14 = arith.constant dense<0.000000e+00> : vector<4x32xf32>
    %37 = vector.multi_reduction <add>, %36, %cst_14 [1] : vector<4x8x32xf32> to vector<4x32xf32>
    %cst_15 = arith.constant dense<0.000000e+00> : vector<4x32xf32>
    %38 = vector.multi_reduction <add>, %19, %cst_15 [1] : vector<4x8x32xf32> to vector<4x32xf32>
    %cst_16 = arith.constant 8.000000e+00 : f32
    %39 = vector.broadcast %cst_16 : f32 to vector<4x32xf32>
    %40 = arith.divf %38, %39 : vector<4x32xf32>
    %41 = arith.addf %40, %37 : vector<4x32xf32>
    %cst_17 = arith.constant dense<0.000000e+00> : vector<4xf32>
    %42 = vector.multi_reduction <add>, %41, %cst_17 [1] : vector<4x32xf32> to vector<4xf32>
    %43 = vector.shape_cast %42 : vector<4xf32> to vector<4x1xf32>
    %cst_18 = arith.constant 3.200000e+01 : f32
    %44 = vector.broadcast %cst_18 : f32 to vector<4x1xf32>
    %45 = arith.divf %43, %44 : vector<4x1xf32>
    %46 = vector.broadcast %45 : vector<4x1xf32> to vector<4x32xf32>
    %47 = arith.subf %41, %46 : vector<4x32xf32>
    %48 = arith.mulf %47, %47 : vector<4x32xf32>
    %cst_19 = arith.constant dense<0.000000e+00> : vector<4xf32>
    %49 = vector.multi_reduction <add>, %48, %cst_19 [1] : vector<4x32xf32> to vector<4xf32>
    %50 = vector.shape_cast %49 : vector<4xf32> to vector<4x1xf32>
    %cst_20 = arith.constant 3.200000e+01 : f32
    %51 = vector.broadcast %cst_20 : f32 to vector<4x1xf32>
    %52 = arith.divf %50, %51 : vector<4x1xf32>
    %53 = vector.broadcast %45 : vector<4x1xf32> to vector<4x32xf32>
    %54 = arith.subf %41, %53 : vector<4x32xf32>
    %cst_21 = arith.constant 9.99999974E-6 : f32
    %55 = vector.broadcast %cst_21 : f32 to vector<4x1xf32>
    %56 = arith.addf %52, %55 : vector<4x1xf32>
    %57 = math.rsqrt %56 : vector<4x1xf32>
    %58 = vector.broadcast %57 : vector<4x1xf32> to vector<4x32xf32>
    %59 = arith.mulf %54, %58 : vector<4x32xf32>
    %60 = vector.broadcast %5 : vector<1x32xf32> to vector<4x32xf32>
    %61 = arith.mulf %59, %60 : vector<4x32xf32>
    %62 = vector.broadcast %6 : vector<1x32xf32> to vector<4x32xf32>
    %63 = arith.addf %61, %62 : vector<4x32xf32>
    %c0_22 = arith.constant 0 : index
    %c0_23 = arith.constant 0 : index
    %c0_24 = arith.constant 0 : index
    %64 = vector.load %arg5[%c0_22, %c0_23, %c0_24] : memref<1x4x32xf32, #tpu.memory_space<vmem>>, vector<1x4x32xf32>
    %65 = vector.shape_cast %64 : vector<1x4x32xf32> to vector<4x32xf32>
    %66 = vector.shape_cast %63 : vector<4x32xf32> to vector<1x4x32xf32>
    tpu.vector_store %arg5[%c0_22, %c0_23, %c0_24], %66 {strides = array<i32>} : memref<1x4x32xf32, #tpu.memory_space<vmem>>, vector<1x4x32xf32>,
    return
  }
  func.func @transform_0(%arg0: i32) -> (i32, i32, i32) {
    %c0_i32 = arith.constant 0 : i32
    %c0_i32_0 = arith.constant 0 : i32
    %c0_i32_1 = arith.constant 0 : i32
    return %arg0, %c0_i32, %c0_i32_0 : i32, i32, i32
  }
  func.func @transform_1(%arg0: i32) -> (i32, i32) {
    %c0_i32 = arith.constant 0 : i32
    %c0_i32_0 = arith.constant 0 : i32
    %c0_i32_1 = arith.constant 0 : i32
    return %c0_i32, %c0_i32_0 : i32, i32
  }
  func.func @transform_2(%arg0: i32) -> (i32, i32) {
    %c0_i32 = arith.constant 0 : i32
    %c0_i32_0 = arith.constant 0 : i32
    %c0_i32_1 = arith.constant 0 : i32
    return %c0_i32, %c0_i32_0 : i32, i32
  }
  func.func @transform_3(%arg0: i32) -> (i32, i32) {
    %c0_i32 = arith.constant 0 : i32
    %c0_i32_0 = arith.constant 0 : i32
    %c0_i32_1 = arith.constant 0 : i32
    return %c0_i32, %c0_i32_0 : i32, i32
  }
  func.func @transform_4(%arg0: i32) -> (i32, i32, i32) {
    %c0_i32 = arith.constant 0 : i32
    %c0_i32_0 = arith.constant 0 : i32
    %c0_i32_1 = arith.constant 0 : i32
    return %arg0, %c0_i32, %c0_i32_0 : i32, i32, i32
  }
}

</mosaic_0001>

<bundles_post_ra>
// kernel: tpu_custom_call.1
= control target key start
LH: loop header
LB: loop body
LE: loop exit
PB: predicated region body
PF: predicated region fallthrough
CT: control target
= control target key end

     0   :  { %9 = vsyncpa [#allocation3], 0  ;;  %s1094_s0 = inlined_call_operand.hbm [shape: f32[1,32,32], index: 0, kind: input, shape index: {}]   ;;  %s1095_s1 = inlined_call_operand.hbm [shape: f32[32,96], index: 1, kind: input, shape index: {}]   ;;  %s1096_s2 = inlined_call_operand.vmem [shape: f32[1,96], index: 2, kind: input, shape index: {}]   ;;  %s1097_s3 = inlined_call_operand.vmem [shape: f32[2,32], index: 3, kind: input, shape index: {}]   ;;  %s1098_s4 = inlined_call_operand.hbm [shape: f32[1,4,32], index: 4, kind: output, shape index: {}]  }
   0x1   :  { %10 = vsyncpa [#allocation6], 0 }
   0x2   :  { %11 = vsyncpa [#allocation4], 0  ;;  %s954_s15 = smov [#allocation2]  }
   0x3   :  { %s17_s16 = sshll.u32 %s954_s15, 4  ;;  %s18_s16 = int_to_ptr.vmem [resolvable:$true] %s17_s16 }
   0x4   :  { %s896_s17 = scalar_lea.vmem %s18_s16, 512  ;;  %p901_p1 = scmp.lt.s32.totalorder %s18_s16, %s18_s16 }
   0x5   :  { %p897_p0 = scmp.ne.s32.totalorder %s18_s16, %s896_s17  ;;  %p902_p2 = scmp.lt.s32.totalorder %s896_s17, %s896_s17 }
   0x7   :  { %p903_p3 = por %p902_p2, %p901_p1 }
   0x9   :  { %p904_p4 = pnand %p903_p3, %p897_p0 }
   0xb   :  { %907 = shalt.err (!%p904_p4)
}
   0xc   :  { %s955_s18 = smov 128   ;;  %s956_s19 = smov 8  }
   0xd   :  { %23 = dma.hbm_to_vmem [thread:$0]  %s1094_s0, 512, %s18_s16, [#allocation3], %s955_s18, %s955_s18, %s956_s19  }
   0xe   :  { %s957_s22 = smov [#allocation5]  }
   0xf   :  { %s29_s23 = sshll.u32 %s957_s22, 4  ;;  %s30_s23 = int_to_ptr.vmem [resolvable:$true] %s29_s23 }
  0x10   :  { %s916_s24 = scalar_lea.vmem %s30_s23, 512  ;;  %p921_p6 = scmp.lt.s32.totalorder %s30_s23, %s30_s23 }
  0x11   :  { %p917_p5 = scmp.ne.s32.totalorder %s30_s23, %s916_s24  ;;  %p922_p7 = scmp.lt.s32.totalorder %s916_s24, %s916_s24 }
  0x13   :  { %p923_p8 = por %p922_p7, %p921_p6 }
  0x15   :  { %p924_p9 = pnand %p923_p8, %p917_p5 }
  0x17   :  { %927 = shalt.err (!%p924_p9)
}
  0x18   :  { %35 = dma.hbm_to_vmem [thread:$0]  %s1095_s1, 512, %s30_s23, [#allocation6], %s955_s18, %s955_s18, %s956_s19  }
  0x19   :  { %948 = dma.done.wait [#allocation3], 512  }
  0x1a   :  { %949 = vsyncadd [#allocation3], 4294966784 }
  0x1b   :  { %950 = dma.done.wait [#allocation6], 512  }
  0x1c   :  { %951 = vsyncadd [#allocation6], 4294966784  ;;  %vm62_vm0 = vcmask 261120   ;;  %v53_v0 = vld [vmem:[#allocation5 + $0x18] sm:$0xff]  ;;  %v52_v1 = vld [vmem:[#allocation5 + $0x10] sm:$0xff]  ;;  %v958_v8 = vmov 0.0  }
  0x1d   :  { %819 = vmatprep.subr.mxu0 %v53_v0  ;;  %v994_v2 = vld [vmem:[#allocation2] sm:$0xff]  ;;  %v51_v3 = vld [vmem:[#allocation5 + $0x8] sm:$0xff]  ;;  %v1000_v6 = vld [vmem:[#allocation2 + $0x10] sm:$0xff]  ;;  %833 = vmatprep.subr.mxu1 %v958_v8  ;;  %vm959_vm1 = vmmov 0   ;;  %s960_s27 = smov 96   ;;  %vm476_vm2 = vcmask 64512  }
  0x1e   :  { %820 = vmatpush3.msra.mxu0 %v53_v0  ;;  %827 = vmatprep.mubr.msk.f32.mxu0 %vm62_vm0, %v994_v2  ;;  %v50_v4 = vld [vmem:[#allocation5] sm:$0xff]  ;;  %v998_v5 = vld [vmem:[#allocation2 + $0x8] sm:$0xff]  ;;  %v1006_v7 = vld [vmem:[#allocation2 + $0x18] sm:$0xff]  ;;  %vm509_vm3 = vcmask 1041409   ;;  %vm511_vm4 = vcmask 1042434   ;;  %vm513_vm5 = vcmask 1043459  }
  0x1f   :  { %821 = vmatprep.subr.mxu0 %v52_v1  ;;  %835 = vmatprep.mubr.msk.f32.mxu1 %vm959_vm1, %v958_v8  ;;  %v790_v10 = vld [vmem:[%s1096_s2] ss:$0 sm:$0xff]  ;;  %vm516_vm6 = vcmask 60416   ;;  %vm602_vm7 = vcmask 785920   ;;  %s961_s2 = smov 64   ;;  %vm695_vm8 = vcmask 257024  }
  0x20   :  { %822 = vmatpush3.msra.mxu0 %v52_v1 }
  0x21   :  { %823 = vmatprep.subr.mxu0 %v51_v3 }
  0x22   :  { %824 = vmatpush3.msra.mxu0 %v51_v3 }
  0x23   :  { %825 = vmatprep.subr.mxu0 %v50_v4 }
  0x24   :  { %826 = vmatpush3.msra.mxu0 %v50_v4 }
  0x25   :  { %828 = vmatmul.mubr.msk.f32.vlgmr.msra.gmra.mxu0 %vm62_vm0, %v998_v5  ;;  %848 = vmatprep.subr.mxu0 %v958_v8 }
  0x26   :  { %830 = vmatprep.mubr.msk.f32.mxu0 %vm62_vm0, %v1000_v6 }
  0x29   :  { %831 = vmatmul.mubr.msk.f32.gmra.mxu0 %vm62_vm0, %v1006_v7 }
  0x2a   :  { %850 = vmatprep.mubr.msk.f32.mxu0 %vm959_vm1, %v958_v8 }
  0xe5   :  { %v829_v9 = vpop.f32.mrf.mxu0 }
  0xe6   :  { %v147_v14 = vadd.f32 %v829_v9, %v790_v10 }
  0xe7   :  { %v141_v11 = vpop.f32.mrf.mxu0 }
  0xe8   :  { %v142_v12 = vadd.f32 %v790_v10, %v141_v11  ;;  %v1018_v18 = vmax.f32 %v147_v14, 0.0 }
  0xe9   :  { %v832_v13 = vpop.f32.mrf.mxu0 }
  0xea   :  { %v1015_v15 = vmax.f32 %v142_v12, 0.0  ;;  %v157_v19 = vadd.f32 %v832_v13, %v790_v10 }
  0xeb   :  { %v151_v16 = vpop.f32.mrf.mxu0 }
  0xec   :  { %v152_v17 = vadd.f32 %v790_v10, %v151_v16  ;;  %165 = vrot.lane.b32.xlu0 %v1015_v15, %s960_s27  ;;  %v1024_v21 = vmax.f32 %v157_v19, 0.0 }
  0xee   :  { %v1020_v20 = vmax.f32 %v152_v17, 0.0 }
  0xf0   :  { %320 = vrot.lane.b32.xlu1 %v1020_v20, %s960_s27  ;;  %243 = vrot.lane.b32.xlu0 %v1018_v18, %s960_s27 }
  0xf4   :  { %396 = vrot.lane.b32.xlu1 %v1024_v21, %s960_s27 }
 0x15e   :  { %v166_v22 = vpop.permute.xlu0 %165 }
 0x15f   :  { %834 = vmatpush3.xpose.msk.msra.mxu1 %vm62_vm0, %v166_v22 }
 0x160   :  { %838 = vmatprep.subr.mxu1 %v958_v8 }
 0x162   :  { %v321_v23 = vpop.permute.xlu1 %320  ;;  %836 = vmatmul.mubr.msk.f32.vlgmr.msra.gmra.mxu1 %vm62_vm0, %v1020_v20  ;;  %v244_v24 = vpop.permute.xlu0 %243 }
 0x163   :  { %839 = vmatpush3.xpose.msk.msra.mxu1 %vm62_vm0, %v244_v24  ;;  %840 = vmatprep.mubr.msk.f32.mxu1 %vm959_vm1, %v958_v8 }
 0x164   :  { %843 = vmatprep.subr.mxu1 %v958_v8 }
 0x166   :  { %v397_v25 = vpop.permute.xlu1 %396  ;;  %841 = vmatmul.mubr.msk.f32.vlgmr.msra.gmra.mxu1 %vm62_vm0, %v1024_v21 }
 0x167   :  { %844 = vmatpush3.xpose.msk.msra.mxu1 %vm62_vm0, %v321_v23  ;;  %849 = vmatpush3.xpose.msk.msra.mxu0 %vm62_vm0, %v397_v25 }
 0x168   :  { %845 = vmatprep.mubr.msk.f32.mxu1 %vm959_vm1, %v958_v8 }
 0x16a   :  { %846 = vmatmul.mubr.msk.f32.vlgmr.msra.gmra.mxu1 %vm62_vm0, %v1015_v15  ;;  %851 = vmatmul.mubr.msk.f32.vlgmr.msra.gmra.mxu0 %vm62_vm0, %v1018_v18 }
 0x222   :  { %v238_v26 = vpop.f32.mrf.mxu1 }
 0x223   :  { %862 = vtanh.f32 %v238_v26 }
 0x224   :  { %v837_v27 = vpop.f32.mrf.mxu1 }
 0x226   :  { %v316_v28 = vpop.f32.mrf.mxu1 }
 0x227   :  { %864 = vtanh.f32 %v316_v28 }
 0x228   :  { %v842_v29 = vpop.f32.mrf.mxu1 }
 0x22a   :  { %v392_v30 = vpop.f32.mrf.mxu1  ;;  %v468_v31 = vpop.f32.mrf.mxu0 }
 0x22b   :  { %866 = vtanh.f32 %v392_v30 }
 0x22c   :  { %868 = vtanh.f32 %v468_v31  ;;  %v847_v32 = vpop.f32.mrf.mxu1  ;;  %v852_v33 = vpop.f32.mrf.mxu0 }
 0x230   :  { %v863_v34 = vpop.eup %862 }
 0x231   :  { %v477_v35 = vsel %vm476_vm2, %v863_v34, 0.0 }
 0x232   :  { %v478_v36 = vrot.slane %v477_v35, 4 }
 0x234   :  { %v865_v37 = vpop.eup %864  ;;  %v479_v38 = vadd.f32 %v478_v36, %v477_v35 }
 0x235   :  { %v484_v39 = vsel %vm476_vm2, %v865_v37, 0.0 }
 0x236   :  { %v485_v40 = vrot.slane %v484_v39, 4  ;;  %v480_v41 = vrot.slane %v479_v38, 2 }
 0x238   :  { %v867_v42 = vpop.eup %866  ;;  %v486_v43 = vadd.f32 %v485_v40, %v484_v39  ;;  %v481_v49 = vadd.f32 %v480_v41, %v479_v38  ;;  %v570_v41 = vlaneseq }
 0x239   :  { %v869_v44 = vpop.eup %868  ;;  %v491_v45 = vsel %vm476_vm2, %v867_v42, 0.0 }
 0x23a   :  { %v487_v46 = vrot.slane %v486_v43, 2  ;;  %v492_v47 = vrot.slane %v491_v45, 4  ;;  %v498_v48 = vsel %vm476_vm2, %v869_v44, 0.0  ;;  %v482_v56 = vrot.slane %v481_v49, 1 }
 0x23b   :  { %v499_v50 = vrot.slane %v498_v48, 4  ;;  %v1049_v42 = vshrl.u32 %v570_v41, 7 }
 0x23c   :  { %v488_v51 = vadd.f32 %v487_v46, %v486_v43  ;;  %v493_v52 = vadd.f32 %v492_v47, %v491_v45  ;;  %v483_v62 = vadd.f32 %v482_v56, %v481_v49 }
 0x23d   :  { %v500_v53 = vadd.f32 %v499_v50, %v498_v48  ;;  %v1052_v46 = vsub.s32 0, %v1049_v42 }
 0x23e   :  { %v489_v54 = vrot.slane %v488_v51, 1  ;;  %v494_v55 = vrot.slane %v493_v52, 2 }
 0x23f   :  { %v501_v57 = vrot.slane %v500_v53, 2 }
 0x240   :  { %v495_v58 = vadd.f32 %v494_v55, %v493_v52  ;;  %v490_v59 = vadd.f32 %v489_v54, %v488_v51 }
 0x241   :  { %v502_v60 = vadd.f32 %v501_v57, %v500_v53 }
 0x242   :  { %v496_v61 = vrot.slane %v495_v58, 1  ;;  %v510_v3 = vsel %vm509_vm3, %v490_v59, %v483_v62 }
 0x243   :  { %v503_v63 = vrot.slane %v502_v60, 1 }
 0x244   :  { %v497_v0 = vadd.f32 %v496_v61, %v495_v58 }
 0x245   :  { %v504_v1 = vadd.f32 %v503_v63, %v502_v60 }
 0x246   :  { %v512_v4 = vsel %vm511_vm4, %v497_v0, %v510_v3 }
 0x247   :  { %v514_v8 = vsel %vm513_vm5, %v504_v1, %v512_v4 }
 0x248   :  { %v517_v9 = vsel %vm516_vm6, %v514_v8, -inf }
 0x249   :  { %518 = vmax.xlane.f32.xlu0 %v517_v9 }
 0x2d2   :  { %v519_v10 = vpop.xlane.xlu0 %518 }
 0x2d3   :  { %v521_v11 = vrot.slane %v519_v10, 1  ;;  %v522_v12 = vrot.slane %v519_v10, 2  ;;  %v523_v13 = vrot.slane %v519_v10, 3  ;;  %v528_v14 = vsub.f32 %v483_v62, %v519_v10 }
 0x2d5   :  { %v529_v16 = vsub.f32 %v490_v59, %v521_v11  ;;  %v530_v17 = vsub.f32 %v497_v0, %v522_v12  ;;  %v531_v19 = vsub.f32 %v504_v1, %v523_v13  ;;  %v532_v22 = vmul.f32 1.442695, %v528_v14 }
 0x2d7   :  { %v534_v23 = vmul.f32 1.442695, %v529_v16  ;;  %v536_v24 = vmul.f32 1.442695, %v530_v17  ;;  %v538_v25 = vmul.f32 1.442695, %v531_v19  ;;  %870 = vpow2.f32 %v532_v22 }
 0x2d9   :  { %872 = vpow2.f32 %v534_v23 }
 0x2da   :  { %874 = vpow2.f32 %v536_v24 }
 0x2db   :  { %876 = vpow2.f32 %v538_v25 }
 0x2e4   :  { %v871_v26 = vpop.eup %870 }
 0x2e6   :  { %v873_v27 = vpop.eup %872 }
 0x2e7   :  { %v875_v28 = vpop.eup %874  ;;  %v544_v29 = vrot.slane %v873_v27, 7 }
 0x2e8   :  { %v877_v30 = vpop.eup %876  ;;  %v546_v31 = vrot.slane %v875_v28, 6 }
 0x2e9   :  { %v545_v32 = vsel %vm509_vm3, %v544_v29, %v871_v26  ;;  %v548_v33 = vrot.slane %v877_v30, 5 }
 0x2ea   :  { %v547_v34 = vsel %vm511_vm4, %v546_v31, %v545_v32  ;;  %v638_v32 = vsel %vm62_vm0, %v998_v5, 0.0 }
 0x2eb   :  { %v549_v35 = vsel %vm513_vm5, %v548_v33, %v547_v34  ;;  %v645_v33 = vsel %vm62_vm0, %v1000_v6, 0.0  ;;  %v639_v34 = vrot.slane %v638_v32, 4 }
 0x2ec   :  { %v551_v36 = vsel %vm516_vm6, %v549_v35, 0.0  ;;  %v631_v35 = vsel %vm62_vm0, %v994_v2, 0.0 }
 0x2ed   :  { %552 = vadd.xlane.f32.xlu1 %v551_v36  ;;  %v646_v36 = vrot.slane %v645_v33, 4 }
 0x376   :  { %v553_v37 = vpop.xlane.xlu1 %552 }
 0x377   :  { %v555_v38 = vrot.slane %v553_v37, 1  ;;  %v556_v39 = vrot.slane %v553_v37, 2  ;;  %v557_v40 = vrot.slane %v553_v37, 3  ;;  %878 = vrcp.f32 %v553_v37 }
 0x378   :  { %v652_v37 = vsel %vm62_vm0, %v1006_v7, 0.0 }
 0x379   :  { %880 = vrcp.f32 %v555_v38  ;;  %v632_v38 = vrot.slane %v631_v35, 4  ;;  %v653_v41 = vrot.slane %v652_v37, 4 }
 0x37a   :  { %882 = vrcp.f32 %v556_v39  ;;  %v640_v39 = vadd.f32 %v639_v34, %v638_v32 }
 0x37b   :  { %884 = vrcp.f32 %v557_v40  ;;  %v647_v40 = vadd.f32 %v646_v36, %v645_v33 }
 0x384   :  { %v879_v43 = vpop.eup %878 }
 0x385   :  { %v563_v51 = vmul.f32 %v879_v43, %v871_v26  ;;  %v633_v43 = vadd.f32 %v632_v38, %v631_v35 }
 0x386   :  { %v881_v44 = vpop.eup %880 }
 0x387   :  { %v883_v45 = vpop.eup %882  ;;  %v565_v47 = vmul.f32 %v881_v44, %v873_v27  ;;  %v573_v54 = vrot.slane %v563_v51, %v1052_v46  ;;  %v641_v44 = vrot.slane %v640_v39, 2  ;;  %v634_v5 = vrot.slane %v633_v43, 2 }
 0x388   :  { %v885_v48 = vpop.eup %884  ;;  %v567_v49 = vmul.f32 %v883_v45, %v875_v28  ;;  %v654_v45 = vadd.f32 %v653_v41, %v652_v37 }
 0x389   :  { %v580_v50 = vrot.slane %v565_v47, %v1052_v46  ;;  %v569_v53 = vmul.f32 %v885_v48, %v877_v30  ;;  %v648_v47 = vrot.slane %v647_v40, 2  ;;  %v642_v48 = vadd.f32 %v641_v44, %v640_v39 }
 0x38a   :  { %v587_v52 = vrot.slane %v567_v49, %v1052_v46  ;;  %v655_v6 = vrot.slane %v654_v45, 2 }
 0x38b   :  { %582 = vbcast.lane.b32.xlu0 %v580_v50, 256  ;;  %v594_v55 = vrot.slane %v569_v53, %v1052_v46  ;;  %v649_v49 = vadd.f32 %v648_v47, %v647_v40  ;;  %v635_v50 = vadd.f32 %v634_v5, %v633_v43  ;;  %v643_v51 = vrot.slane %v642_v48, 1  ;;  %v55_v40 = vld [vmem:[%s1097_s3] sm:$0x3]  ;;  %s962_s3 = smov [#allocation7]  }
 0x38c   :  { %589 = vbcast.lane.b32.xlu1 %v587_v52, 256  ;;  %v656_v2 = vadd.f32 %v655_v6, %v654_v45  ;;  %v756_v43 = vsub.s32 1, %v1049_v42  ;;  %v749_v44 = vrot.slane %v55_v40, %v1052_v46  ;;  %s780_s30 = sshll.u32 %s962_s3, 4  ;;  %s781_s30 = int_to_ptr.vmem [resolvable:$true] %s780_s30 }
 0x38d   :  { %v650_v52 = vrot.slane %v649_v49, 1  ;;  %v644_v53 = vadd.f32 %v643_v51, %v642_v48  ;;  %s928_s5 = scalar_lea.vmem %s781_s30, 64  ;;  %p933_p11 = scmp.lt.s32.totalorder %s781_s30, %s781_s30 }
 0x38e   :  { %v657_v7 = vrot.slane %v656_v2, 1  ;;  %v757_v51 = vrot.slane %v55_v40, %v756_v43  ;;  %p929_p10 = scmp.ne.s32.totalorder %s781_s30, %s928_s5  ;;  %p934_p12 = scmp.lt.s32.totalorder %s928_s5, %s928_s5 }
 0x38f   :  { %575 = vbcast.lane.b32.xlu0 %v573_v54, 256  ;;  %v636_v54 = vrot.slane %v635_v50, 1 }
 0x390   :  { %596 = vbcast.lane.b32.xlu1 %v594_v55, 256  ;;  %v651_v55 = vadd.f32 %v650_v52, %v649_v49  ;;  %p935_p13 = por %p934_p12, %p933_p11 }
 0x392   :  { %p936_p0 = pnand %p935_p13, %p929_p10 }
 0x3fd   :  { %v583_v56 = vpop.permute.xlu0 %582 }
 0x3fe   :  { %v590_v57 = vpop.permute.xlu1 %589  ;;  %v599_v58 = vmul.f32 %v583_v56, %v1018_v18  ;;  %v661_v56 = vmul.f32 0.125, %v644_v53 }
 0x3ff   :  { %v600_v59 = vmul.f32 %v590_v57, %v1020_v20  ;;  %v637_v57 = vadd.f32 %v636_v54, %v635_v50 }
 0x400   :  { %v610_v60 = vsel %vm602_vm7, %v599_v58, 0.0  ;;  %v662_v58 = vmul.f32 0.125, %v651_v55 }
 0x401   :  { %v617_v61 = vsel %vm602_vm7, %v600_v59, 0.0  ;;  %v611_v62 = vrot.slane %v610_v60, 4  ;;  %v576_v63 = vpop.permute.xlu0 %575  ;;  %v658_v59 = vadd.f32 %v657_v7, %v656_v2 }
 0x402   :  { %v618_v0 = vrot.slane %v617_v61, 4  ;;  %v597_v1 = vpop.permute.xlu1 %596  ;;  %v598_v3 = vmul.f32 %v576_v63, %v1015_v15  ;;  %v660_v63 = vmul.f32 0.125, %v637_v57 }
 0x403   :  { %v612_v4 = vadd.f32 %v611_v62, %v610_v60  ;;  %v601_v8 = vmul.f32 %v597_v1, %v1024_v21  ;;  %v663_v1 = vmul.f32 0.125, %v658_v59 }
 0x404   :  { %v619_v9 = vadd.f32 %v618_v0, %v617_v61  ;;  %v603_v10 = vsel %vm602_vm7, %v598_v3, 0.0 }
 0x405   :  { %v613_v11 = vrot.slane %v612_v4, 2  ;;  %v624_v18 = vsel %vm602_vm7, %v601_v8, 0.0  ;;  %v604_v20 = vrot.slane %v603_v10, 4 }
 0x406   :  { %v620_v12 = vrot.slane %v619_v9, 2  ;;  %v625_v13 = vrot.slane %v624_v18, 4 }
 0x407   :  { %v614_v14 = vadd.f32 %v613_v11, %v612_v4  ;;  %v605_v16 = vadd.f32 %v604_v20, %v603_v10 }
 0x408   :  { %v621_v17 = vadd.f32 %v620_v12, %v619_v9  ;;  %v626_v19 = vadd.f32 %v625_v13, %v624_v18 }
 0x409   :  { %v606_v22 = vrot.slane %v605_v16, 2  ;;  %v615_v23 = vrot.slane %v614_v14, 1 }
 0x40a   :  { %v627_v24 = vrot.slane %v626_v19, 2  ;;  %v622_v15 = vrot.slane %v621_v17, 1 }
 0x40b   :  { %v607_v25 = vadd.f32 %v606_v22, %v605_v16  ;;  %v616_v26 = vadd.f32 %v615_v23, %v614_v14 }
 0x40c   :  { %v628_v21 = vadd.f32 %v627_v24, %v626_v19  ;;  %v623_v27 = vadd.f32 %v622_v15, %v621_v17 }
 0x40d   :  { %670 = vrot.lane.b32.xlu0 %v616_v26, %s961_s2  ;;  %v608_v28 = vrot.slane %v607_v25, 1 }
 0x40e   :  { %672 = vrot.lane.b32.xlu1 %v623_v27, %s961_s2  ;;  %v629_v29 = vrot.slane %v628_v21, 1 }
 0x40f   :  { %v609_v30 = vadd.f32 %v608_v28, %v607_v25 }
 0x410   :  { %v630_v31 = vadd.f32 %v629_v29, %v628_v21 }
 0x411   :  { %668 = vrot.lane.b32.xlu0 %v609_v30, %s961_s2 }
 0x412   :  { %674 = vrot.lane.b32.xlu1 %v630_v31, %s961_s2 }
 0x47f   :  { %v671_v60 = vpop.permute.xlu0 %670 }
 0x480   :  { %v673_v61 = vpop.permute.xlu1 %672  ;;  %v681_v62 = vadd.f32 %v671_v60, %v661_v56 }
 0x481   :  { %v682_v0 = vadd.f32 %v673_v61, %v662_v58 }
 0x482   :  { %v688_v4 = vrot.slane %v681_v62, 7 }
 0x483   :  { %v669_v3 = vpop.permute.xlu0 %668  ;;  %v690_v10 = vrot.slane %v682_v0, 6 }
 0x484   :  { %v675_v8 = vpop.permute.xlu1 %674  ;;  %v680_v9 = vadd.f32 %v669_v3, %v660_v63 }
 0x485   :  { %v683_v11 = vadd.f32 %v675_v8, %v663_v1 }
 0x486   :  { %v689_v18 = vsel %vm509_vm3, %v688_v4, %v680_v9 }
 0x487   :  { %v692_v20 = vrot.slane %v683_v11, 5  ;;  %v691_v12 = vsel %vm511_vm4, %v690_v10, %v689_v18 }
 0x489   :  { %v693_v13 = vsel %vm513_vm5, %v692_v20, %v691_v12 }
 0x48a   :  { %v696_v14 = vsel %vm695_vm8, %v693_v13, 0.0 }
 0x48b   :  { %697 = vadd.xlane.f32.xlu0 %v696_v14 }
 0x514   :  { %v698_v16 = vpop.xlane.xlu0 %697 }
 0x515   :  { %v700_v17 = vmul.f32 0.03125, %v698_v16 }
 0x517   :  { %v702_v19 = vrot.slane %v700_v17, 1  ;;  %v703_v22 = vrot.slane %v700_v17, 2  ;;  %v704_v23 = vrot.slane %v700_v17, 3  ;;  %v709_v24 = vsub.f32 %v680_v9, %v700_v17 }
 0x519   :  { %v710_v15 = vsub.f32 %v681_v62, %v702_v19  ;;  %v711_v25 = vsub.f32 %v682_v0, %v703_v22  ;;  %v712_v26 = vsub.f32 %v683_v11, %v704_v23  ;;  %v713_v29 = vmul.f32 %v709_v24, %v709_v24 }
 0x51b   :  { %v714_v21 = vmul.f32 %v710_v15, %v710_v15  ;;  %v715_v27 = vmul.f32 %v711_v25, %v711_v25  ;;  %v716_v28 = vmul.f32 %v712_v26, %v712_v26 }
 0x51d   :  { %v721_v30 = vrot.slane %v714_v21, 7  ;;  %v723_v31 = vrot.slane %v715_v27, 6  ;;  %v725_v33 = vrot.slane %v716_v28, 5 }
 0x51f   :  { %v722_v32 = vsel %vm509_vm3, %v721_v30, %v713_v29 }
 0x520   :  { %v724_v34 = vsel %vm511_vm4, %v723_v31, %v722_v32 }
 0x521   :  { %v726_v35 = vsel %vm513_vm5, %v725_v33, %v724_v34 }
 0x522   :  { %v728_v36 = vsel %vm695_vm8, %v726_v35, 0.0 }
 0x523   :  { %729 = vadd.xlane.f32.xlu1 %v728_v36 }
 0x5ac   :  { %v730_v37 = vpop.xlane.xlu1 %729 }
 0x5ad   :  { %v731_v38 = vmul.f32 0.03125, %v730_v37 }
 0x5af   :  { %v732_v39 = vadd.f32 1e-05, %v731_v38 }
 0x5b1   :  { %886 = vrsqrt.f32 %v732_v39 }
 0x5be   :  { %v887_v41 = vpop.eup %886 }
 0x5bf   :  { %v735_v45 = vrot.slane %v887_v41, 1  ;;  %v736_v47 = vrot.slane %v887_v41, 2  ;;  %v737_v5 = vrot.slane %v887_v41, 3  ;;  %v742_v48 = vmul.f32 %v887_v41, %v709_v24 }
 0x5c1   :  { %v743_v49 = vmul.f32 %v735_v45, %v710_v15  ;;  %v744_v6 = vmul.f32 %v736_v47, %v711_v25  ;;  %v745_v50 = vmul.f32 %v737_v5, %v712_v26  ;;  %v750_v52 = vmul.f32 %v749_v44, %v742_v48 }
 0x5c3   :  { %v751_v2 = vmul.f32 %v749_v44, %v743_v49  ;;  %v752_v53 = vmul.f32 %v749_v44, %v744_v6  ;;  %v753_v54 = vmul.f32 %v749_v44, %v745_v50  ;;  %v758_v57 = vadd.f32 %v757_v51, %v750_v52 }
 0x5c5   :  { %v759_v55 = vadd.f32 %v757_v51, %v751_v2  ;;  %v760_v7 = vadd.f32 %v757_v51, %v752_v53  ;;  %v761_v56 = vadd.f32 %v757_v51, %v753_v54 }
 0x5c7   :  { %v766_v58 = vrot.slane %v759_v55, 7  ;;  %v768_v42 = vrot.slane %v760_v7, 6  ;;  %v770_v59 = vrot.slane %v761_v56, 5 }
 0x5c9   :  { %v767_v46 = vsel %vm509_vm3, %v766_v58, %v758_v57 }
 0x5ca   :  { %v769_v60 = vsel %vm511_vm4, %v768_v42, %v767_v46 }
 0x5cb   :  { %v771_v61 = vsel %vm513_vm5, %v770_v59, %v769_v60 }
 0x5cc   :  { %773 = vst.msk [vmem:[#allocation7] sm:$0xf] %vm695_vm8, %v771_v61 }
 0x5cd   :  { %939 = shalt.err (!%p936_p0)
}
 0x5ce   :  { %783 = dma.vmem_to_hbm [thread:$0]  %s781_s30, 64, %s1098_s4, [#allocation4]  }
 0x5cf   :  { %952 = dma.done.wait [#allocation4], 64  }
 0x5d0   :  { %953 = vsyncadd [#allocation4], 4294967232 }
 0x5d1   :  { %787 = vsyncpa [#allocation3], 1 }
 0x5d2   :  { %788 = vsyncpa [#allocation6], 1 }
 0x5d3   :  { %789 = vsyncpa [#allocation4], 1 }

</bundles_post_ra>
